<compile_context>
chip_gen: v5e
topology: v5e:2x2
jax: 0.10.0
libtpu: 0.0.40
codegen_flags: <defaults>
</compile_context>

<pallas_src>
import jax
import jax.numpy as jnp
import numpy as np
from jax.experimental import pallas as pl
from jax.experimental.pallas import tpu as pltpu


# ----------------------------- Pallas kernel ------------------------------ #
def _object_kernel(k_ref, params_ref, cano_ref, out_ref):
    """One grid step = F_BLK frames x N_TILE points.

    k_ref:      (1, 9)            SMEM, flattened intrinsics (frame-invariant)
    params_ref: (12, F_BLK, 1)    VMEM, per-frame [scale*R (9), t (3)]
    cano_ref:   (3, N_TILE)       VMEM, canonical points, coordinate-major
    out_ref:    (5, F_BLK, N_TILE) VMEM, rows = [xw, yw, zw, u, v]
    """
    # canonical coordinate rows (1, N_TILE) — broadcast along sublanes (frames)
    xc = cano_ref[0:1, :]
    yc = cano_ref[1:2, :]
    zc = cano_ref[2:3, :]

    # per-frame scalars as (F_BLK, 1) columns — broadcast along lanes (points)
    r00 = params_ref[0]; r01 = params_ref[1]; r02 = params_ref[2]
    r10 = params_ref[3]; r11 = params_ref[4]; r12 = params_ref[5]
    r20 = params_ref[6]; r21 = params_ref[7]; r22 = params_ref[8]
    tx = params_ref[9]; ty = params_ref[10]; tz = params_ref[11]

    # pts_w = (scale*R) @ cano + t   (scale already folded into R)
    xw = r00 * xc + r01 * yc + r02 * zc + tx        # (F_BLK, N_TILE)
    yw = r10 * xc + r11 * yc + r12 * zc + ty
    zw = r20 * xc + r21 * yc + r22 * zc + tz

    # pts_w_results[pts_w[:, :, 2] == 0.0] = 1e-08  (whole point replaced)
    zero_z = zw == 0.0
    eps = jnp.float32(1e-8)
    xw = jnp.where(zero_z, eps, xw)
    yw = jnp.where(zero_z, eps, yw)
    zw = jnp.where(zero_z, eps, zw)

    out_ref[0] = xw
    out_ref[1] = yw
    out_ref[2] = zw

    # project2d_batch(K, pts_w): K @ pts_w, divide by homogeneous coordinate.
    k00 = k_ref[0, 0]; k01 = k_ref[0, 1]; k02 = k_ref[0, 2]
    k10 = k_ref[0, 3]; k11 = k_ref[0, 4]; k12 = k_ref[0, 5]
    k20 = k_ref[0, 6]; k21 = k_ref[0, 7]; k22 = k_ref[0, 8]

    u = k00 * xw + k01 * yw + k02 * zw
    v = k10 * xw + k11 * yw + k12 * zw
    w = k20 * xw + k21 * yw + k22 * zw

    # approx reciprocal on EUP + one Newton step (VALU) -> ~f32-exact divide
    inv_w = pl.reciprocal(w, approx=True)
    inv_w = inv_w * (2.0 - w * inv_w)

    out_ref[3] = u * inv_w
    out_ref[4] = v * inv_w


# ------------------------------- glue (JAX) -------------------------------- #
def axis_angle_to_matrix_flat(aa):
    """Rodrigues formula. aa: (F, 3) -> (F, 9) row-major rotation matrices."""
    angle = jnp.sqrt(jnp.sum(aa * aa, axis=-1, keepdims=True))     # (F, 1)
    k = aa / jnp.maximum(angle, 1e-12)
    kx, ky, kz = k[:, 0], k[:, 1], k[:, 2]
    a = angle[:, 0]
    c = jnp.cos(a); s = jnp.sin(a); t = 1.0 - c
    return jnp.stack([
        c + kx * kx * t, kx * ky * t - kz * s, kx * kz * t + ky * s,
        ky * kx * t + kz * s, c + ky * ky * t, ky * kz * t - kx * s,
        kz * kx * t - ky * s, kz * ky * t + kx * s, c + kz * kz * t,
    ], axis=-1)                                                    # (F, 9)


def object_parameters_forward(obj_rot, obj_transl, obj_scale, obj_cano, K):
    """Mirrors ObjectParameters.forward().

    obj_rot:    (F, 3)  axis-angle parameters
    obj_transl: (F, 3)
    obj_scale:  (1,)
    obj_cano:   (N, 4)  denormalized homogeneous canonical points (buffer)
    K:          (3, 3)  intrinsics
    """
    F = obj_rot.shape[0]
    N = obj_cano.shape[0]

    F_BLK = 8
    Fpad = ((F + F_BLK - 1) // F_BLK) * F_BLK

    Npad = ((N + 127) // 128) * 128
    if Npad <= 1024:
        N_TILE = Npad
    else:
        N_TILE = 1024
        Npad = ((Npad + N_TILE - 1) // N_TILE) * N_TILE

    # Rotation matrices; scale folded into R for the kernel (9 muls/frame in XLA).
    rot_flat = axis_angle_to_matrix_flat(obj_rot)                        # (F, 9)
    rot_scaled = rot_flat * obj_scale.astype(jnp.float32)                # (F, 9)
    params = jnp.concatenate(
        [rot_scaled, obj_transl.astype(jnp.float32)], axis=1)           # (F, 12)
    # (12, Fpad, 1): leading index = which scalar, frames on sublane axis.
    params_pad = jnp.zeros((12, Fpad, 1), jnp.float32).at[:, :F, 0].set(params.T)

    cano3 = obj_cano[:, :3].astype(jnp.float32).T                        # (3, N)
    cano_pad = jnp.zeros((3, Npad), jnp.float32).at[:, :N].set(cano3)

    k_flat = K.reshape(1, 9).astype(jnp.float32)

    out = pl.pallas_call(
        _object_kernel,
        grid=(Fpad // F_BLK, Npad // N_TILE),
        in_specs=[
            pl.BlockSpec(memory_space=pltpu.MemorySpace.SMEM),           # K
            pl.BlockSpec((12, F_BLK, 1), lambda fb, pb: (0, fb, 0)),     # params
            pl.BlockSpec((3, N_TILE), lambda fb, pb: (0, pb)),           # cano
        ],
        out_specs=pl.BlockSpec((5, F_BLK, N_TILE),
                               lambda fb, pb: (0, fb, pb)),
        out_shape=jax.ShapeDtypeStruct((5, Fpad, Npad), jnp.float32),
        compiler_params=pltpu.CompilerParams(
            dimension_semantics=("parallel", "parallel")),
    )(k_flat, params_pad, cano_pad)

    # Back to the PyTorch conventions: j3d (F, N, 3), j2d (F, N, 2).
    j3d = jnp.transpose(out[:3, :F, :N], (1, 2, 0))
    j2d = jnp.transpose(out[3:5, :F, :N], (1, 2, 0))

    # o2w_all = eye(4) with (unscaled) rotation / translation filled in.
    rot_mat = rot_flat.reshape(F, 3, 3)
    top = jnp.concatenate(
        [rot_mat, obj_transl[:, :, None].astype(jnp.float32)], axis=2)  # (F,3,4)
    bottom = jnp.tile(jnp.array([[[0., 0., 0., 1.]]], jnp.float32), (F, 1, 1))
    o2w_all = jnp.concatenate([top, bottom], axis=1)                     # (F,4,4)

    return {
        'j3d': j3d,
        'j2d': j2d,
        'K': K,
        'obj_scale': obj_scale,
        'o2w_all': o2w_all,
        # TODO(synk): 'im_paths' is a Python list of strings (no array/Pallas
        # equivalent); the original module just passes it through.
    }


# --------------------------- pure-JAX reference ---------------------------- #
def _reference(obj_rot, obj_transl, obj_scale, obj_cano, K):
    F = obj_rot.shape[0]
    rot_mat = axis_angle_to_matrix_flat(obj_rot).reshape(F, 3, 3)
    cano = (obj_cano[:, :3] * obj_scale).T[None].repeat(F, axis=0)      # (F,3,N)
    pts_w = jnp.einsum('fij,fjn->fin', rot_mat, cano) + obj_transl[:, :, None]
    pts_w = jnp.transpose(pts_w, (0, 2, 1))                             # (F,N,3)
    mask = pts_w[:, :, 2:3] == 0.0
    pts_w = jnp.where(mask, 1e-8, pts_w)
    Kb = jnp.broadcast_to(K[None], (F, 3, 3))
    homo = jnp.einsum('fij,fnj->fni', Kb, pts_w)
    j2d = homo[:, :, :2] / homo[:, :, 2:3]
    return pts_w, j2d


# ---------------------------------- main ----------------------------------- #
if __name__ == "__main__":
    key = jax.random.PRNGKey(0)
    k1, k2, k3 = jax.random.split(key, 3)

    F = 4        # num frames
    N = 100      # num canonical object points

    obj_rot = 0.5 * jax.random.normal(k1, (F, 3), dtype=jnp.float32)
    obj_transl = jax.random.normal(k2, (F, 3), dtype=jnp.float32) \
        + jnp.array([0.0, 0.0, 3.0], jnp.float32)
    obj_scale = jnp.ones((1,), jnp.float32)
    pts = jax.random.normal(k3, (N, 3), dtype=jnp.float32)
    obj_cano = jnp.concatenate([pts, jnp.ones((N, 1), jnp.float32)], axis=-1)
    K = jnp.array([[500.0, 0.0, 64.0],
                   [0.0, 500.0, 64.0],
                   [0.0, 0.0, 1.0]], jnp.float32)

    out = object_parameters_forward(obj_rot, obj_transl, obj_scale, obj_cano, K)
    jax.block_until_ready(out)

    j3d_ref, j2d_ref = _reference(obj_rot, obj_transl, obj_scale, obj_cano, K)
    np.testing.assert_allclose(np.asarray(out['j3d']), np.asarray(j3d_ref),
                               rtol=1e-5, atol=1e-5)
    np.testing.assert_allclose(np.asarray(out['j2d']), np.asarray(j2d_ref),
                               rtol=1e-4, atol=1e-3)
    assert out['o2w_all'].shape == (F, 4, 4)
    assert out['j3d'].shape == (F, N, 3) and out['j2d'].shape == (F, N, 2)

    print("KERNEL_OK")
</pallas_src>

<mosaic_0001>
module attributes {stable_mosaic.version = 11 : i64} {
  func.func @_object_kernel(%arg0: i32, %arg1: i32, %arg2: memref<1x9xf32, #tpu.memory_space<smem>>, %arg3: memref<12x8x1xf32, #tpu.memory_space<vmem>>, %arg4: memref<3x128xf32, #tpu.memory_space<vmem>>, %arg5: memref<5x8x128xf32, #tpu.memory_space<vmem>>) attributes {dimension_semantics = [#tpu.dimension_semantics<parallel>, #tpu.dimension_semantics<parallel>], iteration_bounds = array<i64: 1, 1>, scalar_prefetch = 0 : i64, scratch_operands = 0 : i64, tpu.core_type = #tpu.core_type<tc>, window_params = [{transform_indices = @transform_0, window_bounds = array<i64: 1, 9>}, {transform_indices = @transform_1, window_bounds = array<i64: 12, 8, 1>}, {transform_indices = @transform_2, window_bounds = array<i64: 3, 128>}, {transform_indices = @transform_3, window_bounds = array<i64: 5, 8, 128>}]} {
    %c0 = arith.constant 0 : index
    %c0_0 = arith.constant 0 : index
    %0 = vector.load %arg4[%c0, %c0_0] : memref<3x128xf32, #tpu.memory_space<vmem>>, vector<1x128xf32>
    %c1 = arith.constant 1 : index
    %c0_1 = arith.constant 0 : index
    %1 = vector.load %arg4[%c1, %c0_1] : memref<3x128xf32, #tpu.memory_space<vmem>>, vector<1x128xf32>
    %c2 = arith.constant 2 : index
    %c0_2 = arith.constant 0 : index
    %2 = vector.load %arg4[%c2, %c0_2] : memref<3x128xf32, #tpu.memory_space<vmem>>, vector<1x128xf32>
    %c0_3 = arith.constant 0 : index
    %c0_4 = arith.constant 0 : index
    %c0_5 = arith.constant 0 : index
    %3 = vector.load %arg3[%c0_3, %c0_4, %c0_5] : memref<12x8x1xf32, #tpu.memory_space<vmem>>, vector<1x8x1xf32>
    %4 = vector.shape_cast %3 : vector<1x8x1xf32> to vector<8x1xf32>
    %c1_6 = arith.constant 1 : index
    %c0_7 = arith.constant 0 : index
    %c0_8 = arith.constant 0 : index
    %5 = vector.load %arg3[%c1_6, %c0_7, %c0_8] : memref<12x8x1xf32, #tpu.memory_space<vmem>>, vector<1x8x1xf32>
    %6 = vector.shape_cast %5 : vector<1x8x1xf32> to vector<8x1xf32>
    %c2_9 = arith.constant 2 : index
    %c0_10 = arith.constant 0 : index
    %c0_11 = arith.constant 0 : index
    %7 = vector.load %arg3[%c2_9, %c0_10, %c0_11] : memref<12x8x1xf32, #tpu.memory_space<vmem>>, vector<1x8x1xf32>
    %8 = vector.shape_cast %7 : vector<1x8x1xf32> to vector<8x1xf32>
    %c3 = arith.constant 3 : index
    %c0_12 = arith.constant 0 : index
    %c0_13 = arith.constant 0 : index
    %9 = vector.load %arg3[%c3, %c0_12, %c0_13] : memref<12x8x1xf32, #tpu.memory_space<vmem>>, vector<1x8x1xf32>
    %10 = vector.shape_cast %9 : vector<1x8x1xf32> to vector<8x1xf32>
    %c4 = arith.constant 4 : index
    %c0_14 = arith.constant 0 : index
    %c0_15 = arith.constant 0 : index
    %11 = vector.load %arg3[%c4, %c0_14, %c0_15] : memref<12x8x1xf32, #tpu.memory_space<vmem>>, vector<1x8x1xf32>
    %12 = vector.shape_cast %11 : vector<1x8x1xf32> to vector<8x1xf32>
    %c5 = arith.constant 5 : index
    %c0_16 = arith.constant 0 : index
    %c0_17 = arith.constant 0 : index
    %13 = vector.load %arg3[%c5, %c0_16, %c0_17] : memref<12x8x1xf32, #tpu.memory_space<vmem>>, vector<1x8x1xf32>
    %14 = vector.shape_cast %13 : vector<1x8x1xf32> to vector<8x1xf32>
    %c6 = arith.constant 6 : index
    %c0_18 = arith.constant 0 : index
    %c0_19 = arith.constant 0 : index
    %15 = vector.load %arg3[%c6, %c0_18, %c0_19] : memref<12x8x1xf32, #tpu.memory_space<vmem>>, vector<1x8x1xf32>
    %16 = vector.shape_cast %15 : vector<1x8x1xf32> to vector<8x1xf32>
    %c7 = arith.constant 7 : index
    %c0_20 = arith.constant 0 : index
    %c0_21 = arith.constant 0 : index
    %17 = vector.load %arg3[%c7, %c0_20, %c0_21] : memref<12x8x1xf32, #tpu.memory_space<vmem>>, vector<1x8x1xf32>
    %18 = vector.shape_cast %17 : vector<1x8x1xf32> to vector<8x1xf32>
    %c8 = arith.constant 8 : index
    %c0_22 = arith.constant 0 : index
    %c0_23 = arith.constant 0 : index
    %19 = vector.load %arg3[%c8, %c0_22, %c0_23] : memref<12x8x1xf32, #tpu.memory_space<vmem>>, vector<1x8x1xf32>
    %20 = vector.shape_cast %19 : vector<1x8x1xf32> to vector<8x1xf32>
    %c9 = arith.constant 9 : index
    %c0_24 = arith.constant 0 : index
    %c0_25 = arith.constant 0 : index
    %21 = vector.load %arg3[%c9, %c0_24, %c0_25] : memref<12x8x1xf32, #tpu.memory_space<vmem>>, vector<1x8x1xf32>
    %22 = vector.shape_cast %21 : vector<1x8x1xf32> to vector<8x1xf32>
    %c10 = arith.constant 10 : index
    %c0_26 = arith.constant 0 : index
    %c0_27 = arith.constant 0 : index
    %23 = vector.load %arg3[%c10, %c0_26, %c0_27] : memref<12x8x1xf32, #tpu.memory_space<vmem>>, vector<1x8x1xf32>
    %24 = vector.shape_cast %23 : vector<1x8x1xf32> to vector<8x1xf32>
    %c11 = arith.constant 11 : index
    %c0_28 = arith.constant 0 : index
    %c0_29 = arith.constant 0 : index
    %25 = vector.load %arg3[%c11, %c0_28, %c0_29] : memref<12x8x1xf32, #tpu.memory_space<vmem>>, vector<1x8x1xf32>
    %26 = vector.shape_cast %25 : vector<1x8x1xf32> to vector<8x1xf32>
    %27 = vector.broadcast %4 : vector<8x1xf32> to vector<8x128xf32>
    %28 = vector.broadcast %0 : vector<1x128xf32> to vector<8x128xf32>
    %29 = arith.mulf %27, %28 : vector<8x128xf32>
    %30 = vector.broadcast %6 : vector<8x1xf32> to vector<8x128xf32>
    %31 = vector.broadcast %1 : vector<1x128xf32> to vector<8x128xf32>
    %32 = arith.mulf %30, %31 : vector<8x128xf32>
    %33 = arith.addf %29, %32 : vector<8x128xf32>
    %34 = vector.broadcast %8 : vector<8x1xf32> to vector<8x128xf32>
    %35 = vector.broadcast %2 : vector<1x128xf32> to vector<8x128xf32>
    %36 = arith.mulf %34, %35 : vector<8x128xf32>
    %37 = arith.addf %33, %36 : vector<8x128xf32>
    %38 = vector.broadcast %22 : vector<8x1xf32> to vector<8x128xf32>
    %39 = arith.addf %37, %38 : vector<8x128xf32>
    %40 = vector.broadcast %10 : vector<8x1xf32> to vector<8x128xf32>
    %41 = vector.broadcast %0 : vector<1x128xf32> to vector<8x128xf32>
    %42 = arith.mulf %40, %41 : vector<8x128xf32>
    %43 = vector.broadcast %12 : vector<8x1xf32> to vector<8x128xf32>
    %44 = vector.broadcast %1 : vector<1x128xf32> to vector<8x128xf32>
    %45 = arith.mulf %43, %44 : vector<8x128xf32>
    %46 = arith.addf %42, %45 : vector<8x128xf32>
    %47 = vector.broadcast %14 : vector<8x1xf32> to vector<8x128xf32>
    %48 = vector.broadcast %2 : vector<1x128xf32> to vector<8x128xf32>
    %49 = arith.mulf %47, %48 : vector<8x128xf32>
    %50 = arith.addf %46, %49 : vector<8x128xf32>
    %51 = vector.broadcast %24 : vector<8x1xf32> to vector<8x128xf32>
    %52 = arith.addf %50, %51 : vector<8x128xf32>
    %53 = vector.broadcast %16 : vector<8x1xf32> to vector<8x128xf32>
    %54 = vector.broadcast %0 : vector<1x128xf32> to vector<8x128xf32>
    %55 = arith.mulf %53, %54 : vector<8x128xf32>
    %56 = vector.broadcast %18 : vector<8x1xf32> to vector<8x128xf32>
    %57 = vector.broadcast %1 : vector<1x128xf32> to vector<8x128xf32>
    %58 = arith.mulf %56, %57 : vector<8x128xf32>
    %59 = arith.addf %55, %58 : vector<8x128xf32>
    %60 = vector.broadcast %20 : vector<8x1xf32> to vector<8x128xf32>
    %61 = vector.broadcast %2 : vector<1x128xf32> to vector<8x128xf32>
    %62 = arith.mulf %60, %61 : vector<8x128xf32>
    %63 = arith.addf %59, %62 : vector<8x128xf32>
    %64 = vector.broadcast %26 : vector<8x1xf32> to vector<8x128xf32>
    %65 = arith.addf %63, %64 : vector<8x128xf32>
    %cst = arith.constant 0.000000e+00 : f32
    %66 = vector.broadcast %cst : f32 to vector<8x128xf32>
    %67 = arith.cmpf oeq, %65, %66 : vector<8x128xf32>
    %cst_30 = arith.constant 9.99999993E-9 : f32
    %68 = vector.broadcast %cst_30 : f32 to vector<8x128xf32>
    %69 = arith.select %67, %68, %39 : vector<8x128xi1>, vector<8x128xf32>
    %cst_31 = arith.constant 9.99999993E-9 : f32
    %70 = vector.broadcast %cst_31 : f32 to vector<8x128xf32>
    %71 = arith.select %67, %70, %52 : vector<8x128xi1>, vector<8x128xf32>
    %cst_32 = arith.constant 9.99999993E-9 : f32
    %72 = vector.broadcast %cst_32 : f32 to vector<8x128xf32>
    %73 = arith.select %67, %72, %65 : vector<8x128xi1>, vector<8x128xf32>
    %c0_33 = arith.constant 0 : index
    %c0_34 = arith.constant 0 : index
    %c0_35 = arith.constant 0 : index
    %74 = vector.load %arg5[%c0_33, %c0_34, %c0_35] : memref<5x8x128xf32, #tpu.memory_space<vmem>>, vector<1x8x128xf32>
    %75 = vector.shape_cast %74 : vector<1x8x128xf32> to vector<8x128xf32>
    %76 = vector.shape_cast %69 : vector<8x128xf32> to vector<1x8x128xf32>
    tpu.vector_store %arg5[%c0_33, %c0_34, %c0_35], %76 {strides = array<i32>} : memref<5x8x128xf32, #tpu.memory_space<vmem>>, vector<1x8x128xf32>,
    %c1_36 = arith.constant 1 : index
    %c0_37 = arith.constant 0 : index
    %c0_38 = arith.constant 0 : index
    %77 = vector.load %arg5[%c1_36, %c0_37, %c0_38] : memref<5x8x128xf32, #tpu.memory_space<vmem>>, vector<1x8x128xf32>
    %78 = vector.shape_cast %77 : vector<1x8x128xf32> to vector<8x128xf32>
    %79 = vector.shape_cast %71 : vector<8x128xf32> to vector<1x8x128xf32>
    tpu.vector_store %arg5[%c1_36, %c0_37, %c0_38], %79 {strides = array<i32>} : memref<5x8x128xf32, #tpu.memory_space<vmem>>, vector<1x8x128xf32>,
    %c2_39 = arith.constant 2 : index
    %c0_40 = arith.constant 0 : index
    %c0_41 = arith.constant 0 : index
    %80 = vector.load %arg5[%c2_39, %c0_40, %c0_41] : memref<5x8x128xf32, #tpu.memory_space<vmem>>, vector<1x8x128xf32>
    %81 = vector.shape_cast %80 : vector<1x8x128xf32> to vector<8x128xf32>
    %82 = vector.shape_cast %73 : vector<8x128xf32> to vector<1x8x128xf32>
    tpu.vector_store %arg5[%c2_39, %c0_40, %c0_41], %82 {strides = array<i32>} : memref<5x8x128xf32, #tpu.memory_space<vmem>>, vector<1x8x128xf32>,
    %c0_42 = arith.constant 0 : index
    %c0_43 = arith.constant 0 : index
    %83 = memref.load %arg2[%c0_42, %c0_43] : memref<1x9xf32, #tpu.memory_space<smem>>
    %c0_44 = arith.constant 0 : index
    %c1_45 = arith.constant 1 : index
    %84 = memref.load %arg2[%c0_44, %c1_45] : memref<1x9xf32, #tpu.memory_space<smem>>
    %c0_46 = arith.constant 0 : index
    %c2_47 = arith.constant 2 : index
    %85 = memref.load %arg2[%c0_46, %c2_47] : memref<1x9xf32, #tpu.memory_space<smem>>
    %c0_48 = arith.constant 0 : index
    %c3_49 = arith.constant 3 : index
    %86 = memref.load %arg2[%c0_48, %c3_49] : memref<1x9xf32, #tpu.memory_space<smem>>
    %c0_50 = arith.constant 0 : index
    %c4_51 = arith.constant 4 : index
    %87 = memref.load %arg2[%c0_50, %c4_51] : memref<1x9xf32, #tpu.memory_space<smem>>
    %c0_52 = arith.constant 0 : index
    %c5_53 = arith.constant 5 : index
    %88 = memref.load %arg2[%c0_52, %c5_53] : memref<1x9xf32, #tpu.memory_space<smem>>
    %c0_54 = arith.constant 0 : index
    %c6_55 = arith.constant 6 : index
    %89 = memref.load %arg2[%c0_54, %c6_55] : memref<1x9xf32, #tpu.memory_space<smem>>
    %c0_56 = arith.constant 0 : index
    %c7_57 = arith.constant 7 : index
    %90 = memref.load %arg2[%c0_56, %c7_57] : memref<1x9xf32, #tpu.memory_space<smem>>
    %c0_58 = arith.constant 0 : index
    %c8_59 = arith.constant 8 : index
    %91 = memref.load %arg2[%c0_58, %c8_59] : memref<1x9xf32, #tpu.memory_space<smem>>
    %92 = vector.broadcast %83 : f32 to vector<8x128xf32>
    %93 = arith.mulf %92, %69 : vector<8x128xf32>
    %94 = vector.broadcast %84 : f32 to vector<8x128xf32>
    %95 = arith.mulf %94, %71 : vector<8x128xf32>
    %96 = arith.addf %93, %95 : vector<8x128xf32>
    %97 = vector.broadcast %85 : f32 to vector<8x128xf32>
    %98 = arith.mulf %97, %73 : vector<8x128xf32>
    %99 = arith.addf %96, %98 : vector<8x128xf32>
    %100 = vector.broadcast %86 : f32 to vector<8x128xf32>
    %101 = arith.mulf %100, %69 : vector<8x128xf32>
    %102 = vector.broadcast %87 : f32 to vector<8x128xf32>
    %103 = arith.mulf %102, %71 : vector<8x128xf32>
    %104 = arith.addf %101, %103 : vector<8x128xf32>
    %105 = vector.broadcast %88 : f32 to vector<8x128xf32>
    %106 = arith.mulf %105, %73 : vector<8x128xf32>
    %107 = arith.addf %104, %106 : vector<8x128xf32>
    %108 = vector.broadcast %89 : f32 to vector<8x128xf32>
    %109 = arith.mulf %108, %69 : vector<8x128xf32>
    %110 = vector.broadcast %90 : f32 to vector<8x128xf32>
    %111 = arith.mulf %110, %71 : vector<8x128xf32>
    %112 = arith.addf %109, %111 : vector<8x128xf32>
    %113 = vector.broadcast %91 : f32 to vector<8x128xf32>
    %114 = arith.mulf %113, %73 : vector<8x128xf32>
    %115 = arith.addf %112, %114 : vector<8x128xf32>
    %116 = tpu.reciprocal %115 {approx = true} : vector<8x128xf32> -> vector<8x128xf32>
    %117 = arith.mulf %115, %116 : vector<8x128xf32>
    %cst_60 = arith.constant 2.000000e+00 : f32
    %118 = vector.broadcast %cst_60 : f32 to vector<8x128xf32>
    %119 = arith.subf %118, %117 : vector<8x128xf32>
    %120 = arith.mulf %116, %119 : vector<8x128xf32>
    %121 = arith.mulf %99, %120 : vector<8x128xf32>
    %c3_61 = arith.constant 3 : index
    %c0_62 = arith.constant 0 : index
    %c0_63 = arith.constant 0 : index
    %122 = vector.load %arg5[%c3_61, %c0_62, %c0_63] : memref<5x8x128xf32, #tpu.memory_space<vmem>>, vector<1x8x128xf32>
    %123 = vector.shape_cast %122 : vector<1x8x128xf32> to vector<8x128xf32>
    %124 = vector.shape_cast %121 : vector<8x128xf32> to vector<1x8x128xf32>
    tpu.vector_store %arg5[%c3_61, %c0_62, %c0_63], %124 {strides = array<i32>} : memref<5x8x128xf32, #tpu.memory_space<vmem>>, vector<1x8x128xf32>,
    %125 = arith.mulf %107, %120 : vector<8x128xf32>
    %c4_64 = arith.constant 4 : index
    %c0_65 = arith.constant 0 : index
    %c0_66 = arith.constant 0 : index
    %126 = vector.load %arg5[%c4_64, %c0_65, %c0_66] : memref<5x8x128xf32, #tpu.memory_space<vmem>>, vector<1x8x128xf32>
    %127 = vector.shape_cast %126 : vector<1x8x128xf32> to vector<8x128xf32>
    %128 = vector.shape_cast %125 : vector<8x128xf32> to vector<1x8x128xf32>
    tpu.vector_store %arg5[%c4_64, %c0_65, %c0_66], %128 {strides = array<i32>} : memref<5x8x128xf32, #tpu.memory_space<vmem>>, vector<1x8x128xf32>,
    return
  }
  func.func @transform_0(%arg0: i32, %arg1: i32) -> (i32, i32) {
    %c0_i32 = arith.constant 0 : i32
    %c0_i32_0 = arith.constant 0 : i32
    %c0_i32_1 = arith.constant 0 : i32
    return %c0_i32, %c0_i32_0 : i32, i32
  }
  func.func @transform_1(%arg0: i32, %arg1: i32) -> (i32, i32, i32) {
    %c0_i32 = arith.constant 0 : i32
    %c0_i32_0 = arith.constant 0 : i32
    %c0_i32_1 = arith.constant 0 : i32
    return %c0_i32, %arg0, %c0_i32_0 : i32, i32, i32
  }
  func.func @transform_2(%arg0: i32, %arg1: i32) -> (i32, i32) {
    %c0_i32 = arith.constant 0 : i32
    %c0_i32_0 = arith.constant 0 : i32
    return %c0_i32, %arg1 : i32, i32
  }
  func.func @transform_3(%arg0: i32, %arg1: i32) -> (i32, i32, i32) {
    %c0_i32 = arith.constant 0 : i32
    %c0_i32_0 = arith.constant 0 : i32
    return %c0_i32, %arg0, %arg1 : i32, i32, i32
  }
}

</mosaic_0001>

<bundles_post_ra>
// kernel: tpu_custom_call.1
= control target key start
LH: loop header
LB: loop body
LE: loop exit
PB: predicated region body
PF: predicated region fallthrough
CT: control target
= control target key end

     0   :  { %8 = vsyncpa [#allocation4], 0  ;;  %s354_s0 = inlined_call_operand.vmem [shape: f32[1,9], index: 0, kind: input, shape index: {}]   ;;  %s355_s1 = inlined_call_operand.vmem [shape: f32[12,8,1], index: 1, kind: input, shape index: {}]   ;;  %s356_s2 = inlined_call_operand.vmem [shape: f32[3,128], index: 2, kind: input, shape index: {}]   ;;  %s357_s3 = inlined_call_operand.hbm [shape: f32[5,8,128], index: 3, kind: output, shape index: {}]  }
   0x1   :  { %9 = vsyncpa [#allocation3], 0  ;;  %s15_s14 = sshll.u32 %s354_s0, 4  ;;  %s278_s15 = smov [#allocation2]   ;;  %s16_s14 = int_to_ptr.vmem [resolvable:$true] %s15_s14 }
   0x2   :  { %18 = dma.vmem_to_smem %s16_s14, 16, %s278_s15, [#allocation4]  }
   0x3   :  { %274 = dma.done.wait [#allocation4], 16  }
   0x4   :  { %275 = vsyncadd [#allocation4], 4294967280 }
   0x5   :  { %27 = sfence }
   0x6   :  { %v211_v0 = vld [vmem:[%s355_s1 + $0x30] sm:$0xff]  ;;  %v31_v1 = vld [vmem:[%s355_s1] sm:$0xff]  ;;  %v208_v2 = vld [vmem:[%s355_s1 + $0x18] sm:$0xff]  ;;  %v279_v3 = vmov 0   ;;  %s223_s17 = sld [smem:[#allocation2 + $0x7]]  ;;  %s280_s24 = smov [#allocation5]  }
   0x7   :  { %231 = vset.pattern.permute.xlu1 %v279_v3  ;;  %230 = vset.pattern.permute.xlu0 %v279_v3  ;;  %v212_v4 = vld [vmem:[%s355_s1 + $0x38] sm:$0xff]  ;;  %v206_v5 = vld [vmem:[%s355_s1 + $0x8] sm:$0xff]  ;;  %v209_v6 = vld [vmem:[%s355_s1 + $0x20] sm:$0xff]  ;;  %s222_s18 = sld [smem:[#allocation2 + $0x6]]  ;;  %s191_s25 = sshll.u32 %s280_s24, 4  ;;  %s192_s25 = int_to_ptr.vmem [resolvable:$true] %s191_s25 }
   0x8   :  { %232 = vset.pattern.permute.xlu2 %v279_v3  ;;  %111 = vperm.xlu0 %230, %v211_v0   ;;  %v213_v7 = vld [vmem:[%s355_s1 + $0x40] sm:$0xff]  ;;  %v207_v8 = vld [vmem:[%s355_s1 + $0x10] sm:$0xff]  ;;  %v210_v9 = vld [vmem:[%s355_s1 + $0x28] sm:$0xff]  ;;  %s224_s19 = sld [smem:[#allocation2 + $0x8]]  ;;  %s193_s28 = sshll.u32 %s357_s3, 4  ;;  %s194_s28 = int_to_ptr.hbm [resolvable:$true] %s193_s28 }
   0x9   :  { %56 = vperm.xlu1 %231, %v31_v1   ;;  %85 = vperm.xlu2 %232, %v208_v2   ;;  %v216_v10 = vld [vmem:[%s355_s1 + $0x58] sm:$0xff]  ;;  %v214_v11 = vld [vmem:[%s355_s1 + $0x48] sm:$0xff]  ;;  %v215_v12 = vld [vmem:[%s355_s1 + $0x50] sm:$0xff]  ;;  %s220_s20 = sld [smem:[#allocation2 + $0x4]]  ;;  %s281_s29 = smov 128  }
   0xa   :  { %v233_v19 = vld [vmem:[%s356_s2] ss:$0 sm:$0xff]  ;;  %v234_v20 = vld [vmem:[%s356_s2 + $0x1] ss:$0 sm:$0xff]  ;;  %v235_v24 = vld [vmem:[%s356_s2 + $0x2] ss:$0 sm:$0xff] }
   0xb   :  { %s217_s2 = sld [smem:[#allocation2 + $0x1]]  ;;  %s282_s30 = smov 8  }
   0xc   :  { %v171_v46 = vstv %s223_s17  ;;  %s144_s21 = sld [smem:[#allocation2]] }
   0xd   :  { %v169_v49 = vstv %s222_s18  ;;  %s219_s0 = sld [smem:[#allocation2 + $0x3]] }
   0xe   :  { %v174_v51 = vstv %s224_s19  ;;  %s218_s22 = sld [smem:[#allocation2 + $0x2]] }
   0xf   :  { %s221_s23 = sld [smem:[#allocation2 + $0x5]]  ;;  %v163_v58 = vstv %s220_s20 }
  0x10   :  { %117 = vperm.xlu0 %230, %v212_v4  }
  0x11   :  { %63 = vperm.xlu1 %231, %v206_v5   ;;  %91 = vperm.xlu2 %232, %v209_v6   ;;  %v155_v57 = vstv %s217_s2 }
  0x12   :  { %v153_v59 = vstv %s144_s21 }
  0x13   :  { %v161_v60 = vstv %s219_s0 }
  0x14   :  { %v158_v2 = vstv %s218_s22 }
  0x15   :  { %v166_v3 = vstv %s221_s23 }
  0x18   :  { %124 = vperm.xlu0 %230, %v213_v7  }
  0x19   :  { %71 = vperm.xlu1 %231, %v207_v8   ;;  %98 = vperm.xlu2 %232, %v210_v9  }
  0x20   :  { %131 = vperm.xlu0 %230, %v216_v10  }
  0x21   :  { %79 = vperm.xlu1 %231, %v214_v11   ;;  %105 = vperm.xlu2 %232, %v215_v12  }
  0x63   :  { %v86_v13 = vpop.permute.xlu2 %85 }
  0x64   :  { %v88_v22 = vmul.f32 %v233_v19, %v86_v13 }
  0x6b   :  { %v92_v16 = vpop.permute.xlu2 %91 }
  0x6c   :  { %v94_v23 = vmul.f32 %v234_v20, %v92_v16 }
  0x6e   :  { %v95_v28 = vadd.f32 %v94_v23, %v88_v22 }
  0x73   :  { %v99_v21 = vpop.permute.xlu2 %98 }
  0x74   :  { %v101_v29 = vmul.f32 %v235_v24, %v99_v21 }
  0x76   :  { %v102_v36 = vadd.f32 %v101_v29, %v95_v28 }
  0x7a   :  { %v112_v14 = vpop.permute.xlu0 %111 }
  0x7b   :  { %v57_v15 = vpop.permute.xlu1 %56  ;;  %v114_v31 = vmul.f32 %v233_v19, %v112_v14  ;;  %v106_v38 = vpop.permute.xlu2 %105 }
  0x7c   :  { %v60_v33 = vmul.f32 %v233_v19, %v57_v15  ;;  %v108_v44 = vadd.f32 %v106_v38, %v102_v36 }
  0x82   :  { %v118_v17 = vpop.permute.xlu0 %117 }
  0x83   :  { %v64_v18 = vpop.permute.xlu1 %63  ;;  %v120_v26 = vmul.f32 %v234_v20, %v118_v17 }
  0x84   :  { %v67_v30 = vmul.f32 %v234_v20, %v64_v18 }
  0x85   :  { %v121_v35 = vadd.f32 %v120_v26, %v114_v31 }
  0x86   :  { %v68_v37 = vadd.f32 %v67_v30, %v60_v33 }
  0x8a   :  { %v125_v25 = vpop.permute.xlu0 %124 }
  0x8b   :  { %v72_v27 = vpop.permute.xlu1 %71  ;;  %v127_v32 = vmul.f32 %v235_v24, %v125_v25 }
  0x8c   :  { %v75_v34 = vmul.f32 %v235_v24, %v72_v27 }
  0x8d   :  { %v128_v39 = vadd.f32 %v127_v32, %v121_v35 }
  0x8e   :  { %v76_v41 = vadd.f32 %v75_v34, %v68_v37 }
  0x92   :  { %v132_v40 = vpop.permute.xlu0 %131 }
  0x93   :  { %v134_v42 = vadd.f32 %v132_v40, %v128_v39  ;;  %v80_v43 = vpop.permute.xlu1 %79 }
  0x94   :  { %v82_v45 = vadd.f32 %v80_v43, %v76_v41 }
  0x95   :  { %vm135_vm0 = vcmp.eq.f32.partialorder %v134_v42, 0.0 }
  0x96   :  { %v137_v47 = vsel %vm135_vm0, 1e-08, %v108_v44  ;;  %v138_v48 = vsel %vm135_vm0, 1e-08, %v134_v42  ;;  %v136_v50 = vsel %vm135_vm0, 1e-08, %v82_v45 }
  0x97   :  { %141 = vst [vmem:[#allocation5 + $0x8] sm:$0xff] %v137_v47  ;;  %v172_v52 = vmul.f32 %v171_v46, %v137_v47  ;;  %v170_v53 = vmul.f32 %v169_v49, %v136_v50  ;;  %v175_v54 = vmul.f32 %v174_v51, %v138_v48  ;;  %v156_v61 = vmul.f32 %v155_v57, %v137_v47 }
  0x98   :  { %143 = vst [vmem:[#allocation5 + $0x10] sm:$0xff] %v138_v48  ;;  %v164_v62 = vmul.f32 %v163_v58, %v137_v47  ;;  %v154_v63 = vmul.f32 %v153_v59, %v136_v50  ;;  %v162_v0 = vmul.f32 %v161_v60, %v136_v50  ;;  %v159_v7 = vmul.f32 %v158_v2, %v138_v48 }
  0x99   :  { %139 = vst [vmem:[#allocation5] sm:$0xff] %v136_v50  ;;  %v173_v55 = vadd.f32 %v172_v52, %v170_v53  ;;  %v167_v8 = vmul.f32 %v166_v3, %v138_v48 }
  0x9a   :  { %v157_v4 = vadd.f32 %v156_v61, %v154_v63  ;;  %v165_v5 = vadd.f32 %v164_v62, %v162_v0 }
  0x9b   :  { %v176_v56 = vadd.f32 %v175_v54, %v173_v55 }
  0x9c   :  { %v160_v10 = vadd.f32 %v159_v7, %v157_v4  ;;  %v168_v11 = vadd.f32 %v167_v8, %v165_v5 }
  0x9d   :  { %236 = vrcp.f32 %v176_v56 }
  0xa3   :  { %v237_v1 = vpop.eup %236 }
  0xa4   :  { %v178_v6 = vmul.f32 %v237_v1, %v176_v56 }
  0xa6   :  { %v179_v9 = vsub.f32 2.0, %v178_v6 }
  0xa8   :  { %v180_v12 = vmul.f32 %v237_v1, %v179_v9 }
  0xaa   :  { %v181_v13 = vmul.f32 %v180_v12, %v160_v10  ;;  %v184_v14 = vmul.f32 %v180_v12, %v168_v11 }
  0xac   :  { %183 = vst [vmem:[#allocation5 + $0x18] sm:$0xff] %v181_v13 }
  0xad   :  { %186 = vst [vmem:[#allocation5 + $0x20] sm:$0xff] %v184_v14 }
  0xae   :  { %199 = dma.vmem_to_hbm [thread:$0]  %s192_s25, 640, %s194_s28, [#allocation3], %s281_s29, %s281_s29, %s282_s30  }
  0xaf   :  { %276 = dma.done.wait [#allocation3], 640  }
  0xb0   :  { %277 = vsyncadd [#allocation3], 4294966656 }
  0xb1   :  { %204 = vsyncpa [#allocation3], 1 }
  0xb2   :  { %205 = vsyncpa [#allocation4], 1 }

</bundles_post_ra>
